<compile_context>
chip_gen: v7x
topology: tpu7x:2x2x1
jax: 0.10.0
libtpu: 0.0.40
codegen_flags: <defaults>
</compile_context>

<pallas_src>
import jax
import jax.numpy as jnp
from jax.experimental import pallas as pl
from jax.experimental.pallas import tpu as pltpu

LOG_SIG_MAX = 2.0
LOG_SIG_MIN = -20.0


def _round_up(x, m):
    return ((x + m - 1) // m) * m


def _cdiv(a, b):
    return -(-a // b)


def _actor_kernel(x_ref, w1_ref, w2_ref, wh_ref, b_ref, out_ref):
    """One batch tile: two hidden layers + fused (mean | log_std) head."""
    H = w1_ref.shape[1]          # hidden_dim
    A2 = wh_ref.shape[1]         # 2 * num_actions (unpadded, lane width = 2A)

    # Packed bias/bounds slab:
    #   row 0 = b1, row 1 = b2, row 2 = fused head bias,
    #   row 3 = per-lane lower bound, row 4 = per-lane upper bound.
    b1 = b_ref[0:1, :H]
    b2 = b_ref[1:2, :H]
    bh = b_ref[2:3, :A2]
    lo = b_ref[3:4, :A2]
    hi = b_ref[4:5, :A2]

    x = x_ref[...].astype(jnp.bfloat16)   # no-op if state is already bf16

    # fc layer 1 + ReLU  (bf16 MXU matmul, f32 accumulate, f32 elementwise)
    h1 = jnp.dot(x, w1_ref[...], preferred_element_type=jnp.float32) + b1
    h1 = jnp.maximum(h1, 0.0)

    # fc layer 2 + ReLU
    h2 = jnp.dot(h1.astype(jnp.bfloat16), w2_ref[...],
                 preferred_element_type=jnp.float32) + b2
    h2 = jnp.maximum(h2, 0.0)

    # fused heads: columns [0, A) = mean, [A, 2A) = log_std
    heads = jnp.dot(h2.astype(jnp.bfloat16), wh_ref[...],
                    preferred_element_type=jnp.float32) + bh

    # lane-wise clamp: mean lanes see (-inf, +inf) -> unchanged,
    # log_std lanes see (LOG_SIG_MIN, LOG_SIG_MAX).
    heads = jnp.minimum(jnp.maximum(heads, lo), hi)

    out_ref[...] = heads.astype(out_ref.dtype)


def actor_forward(state, params, *, block_b=1024):
    """ActorNetwork.forward as one Pallas kernel.

    state:  [B, num_inputs] float32 (or bfloat16)
    params: dict with w1,b1,w2,b2,wm,bm,ws,bs (weights [in,out], biases [1,out])
    returns (mean, log_std): each [B, num_actions] float32
    """
    B, num_inputs = state.shape
    H = params["w1"].shape[1]
    A = params["wm"].shape[1]
    A2 = 2 * A
    W_b = max(H, A2)                     # bias/bounds slab width

    # Fuse the two head weights/biases into one [H, 2A] matmul operand.
    wh = jnp.concatenate([params["wm"], params["ws"]], axis=1)       # [H, 2A]
    bh = jnp.concatenate([params["bm"], params["bs"]], axis=1)       # [1, 2A]

    # Per-lane clamp bounds: mean lanes unclamped, log_std lanes clamped.
    lo = jnp.concatenate([jnp.full((A,), -jnp.inf, jnp.float32),
                          jnp.full((A,), LOG_SIG_MIN, jnp.float32)])
    hi = jnp.concatenate([jnp.full((A,), jnp.inf, jnp.float32),
                          jnp.full((A,), LOG_SIG_MAX, jnp.float32)])

    # Pack biases + bounds into one [8, W_b] f32 slab (one operand, one DMA).
    bias_slab = jnp.zeros((8, W_b), jnp.float32)
    bias_slab = bias_slab.at[0, :H].set(params["b1"][0])
    bias_slab = bias_slab.at[1, :H].set(params["b2"][0])
    bias_slab = bias_slab.at[2, :A2].set(bh[0])
    bias_slab = bias_slab.at[3, :A2].set(lo)
    bias_slab = bias_slab.at[4, :A2].set(hi)

    # bf16 weights (MXU native, halves weight DMA bytes); accumulation is f32.
    w1 = params["w1"].astype(jnp.bfloat16)
    w2 = params["w2"].astype(jnp.bfloat16)
    wh = wh.astype(jnp.bfloat16)

    # Batch tiling:
    #  * >= 2 tiles whenever B >= 16 so v7x's two TensorCores both engage,
    #  * tile sized from ceil(B / n_tiles) so padding stays a few rows.
    Bp0 = _round_up(B, 8)
    n_tiles = max(_cdiv(Bp0, block_b), 2) if Bp0 >= 16 else 1
    TB = _round_up(_cdiv(Bp0, n_tiles), 8)
    Bp = _round_up(Bp0, TB)
    x = state if Bp == B else jnp.pad(state, ((0, Bp - B), (0, 0)))

    flops = 2 * Bp * (num_inputs * H + H * H + H * A2)
    bytes_accessed = (Bp * num_inputs * x.dtype.itemsize          # state read
                      + 2 * (w1.size + w2.size + wh.size)         # bf16 weights
                      + 4 * bias_slab.size                        # bias slab
                      + 4 * Bp * A2)                              # f32 output

    out = pl.pallas_call(
        _actor_kernel,
        out_shape=jax.ShapeDtypeStruct((Bp, A2), jnp.float32),
        grid=(Bp // TB,),
        in_specs=[
            pl.BlockSpec((TB, num_inputs), lambda i: (i, 0)),   # state tile
            pl.BlockSpec(w1.shape, lambda i: (0, 0)),           # resident weights
            pl.BlockSpec(w2.shape, lambda i: (0, 0)),
            pl.BlockSpec(wh.shape, lambda i: (0, 0)),
            pl.BlockSpec(bias_slab.shape, lambda i: (0, 0)),    # packed biases/bounds
        ],
        out_specs=pl.BlockSpec((TB, A2), lambda i: (i, 0)),     # unpadded width
        compiler_params=pltpu.CompilerParams(
            dimension_semantics=("parallel",),                  # batch -> 2 TCs on v7x
            vmem_limit_bytes=32 * 1024 * 1024,
        ),
        cost_estimate=pl.CostEstimate(
            flops=int(flops),
            transcendentals=0,
            bytes_accessed=int(bytes_accessed),
        ),
    )(x, w1, w2, wh, bias_slab)

    mean = out[:B, :A]
    log_std = out[:B, A:A2]
    return mean, log_std


def init_actor_params(key, num_inputs, num_actions, hidden_dim):
    """Deterministic init mimicking nn.Linear default (U[-1/sqrt(fan_in), +])."""
    keys = jax.random.split(key, 8)

    def linear(kw, kb, fan_in, fan_out):
        bound = 1.0 / jnp.sqrt(jnp.float32(fan_in))
        w = jax.random.uniform(kw, (fan_in, fan_out), jnp.float32, -bound, bound)
        b = jax.random.uniform(kb, (1, fan_out), jnp.float32, -bound, bound)
        return w, b

    w1, b1 = linear(keys[0], keys[1], num_inputs, hidden_dim)
    w2, b2 = linear(keys[2], keys[3], hidden_dim, hidden_dim)
    wm, bm = linear(keys[4], keys[5], hidden_dim, num_actions)
    ws, bs = linear(keys[6], keys[7], hidden_dim, num_actions)
    return dict(w1=w1, b1=b1, w2=w2, b2=b2, wm=wm, bm=bm, ws=ws, bs=bs)


def actor_forward_ref(state, p):
    """Pure-JAX reference using the same bf16-weight / f32-accumulate recipe."""
    w1 = p["w1"].astype(jnp.bfloat16)
    w2 = p["w2"].astype(jnp.bfloat16)
    wm = p["wm"].astype(jnp.bfloat16)
    ws = p["ws"].astype(jnp.bfloat16)
    h1 = jnp.maximum(
        jnp.dot(state.astype(jnp.bfloat16), w1,
                preferred_element_type=jnp.float32) + p["b1"], 0.0)
    h2 = jnp.maximum(
        jnp.dot(h1.astype(jnp.bfloat16), w2,
                preferred_element_type=jnp.float32) + p["b2"], 0.0)
    mean = jnp.dot(h2.astype(jnp.bfloat16), wm,
                   preferred_element_type=jnp.float32) + p["bm"]
    log_std = jnp.dot(h2.astype(jnp.bfloat16), ws,
                      preferred_element_type=jnp.float32) + p["bs"]
    log_std = jnp.clip(log_std, LOG_SIG_MIN, LOG_SIG_MAX)
    return mean, log_std


if __name__ == "__main__":
    # Small shapes consistent with the module:
    #   batch=8, num_inputs=16, hidden_dim=32, num_actions=4
    B, NUM_INPUTS, HIDDEN, NUM_ACTIONS = 8, 16, 32, 4

    key = jax.random.PRNGKey(0)
    k_state, k_params, k_state2 = jax.random.split(key, 3)

    state = jax.random.normal(k_state, (B, NUM_INPUTS), jnp.float32)
    params = init_actor_params(k_params, NUM_INPUTS, NUM_ACTIONS, HIDDEN)

    mean, log_std = actor_forward(state, params)
    jax.block_until_ready((mean, log_std))

    # sanity check against pure-JAX reference (same bf16-weight recipe).
    # NOTE: bf16 weights/activations deviate from the f32 PyTorch module by
    # ~1e-2 relative error; output accumulation/storage stays f32.
    mean_ref, log_std_ref = actor_forward_ref(state, params)
    assert mean.shape == (B, NUM_ACTIONS) and log_std.shape == (B, NUM_ACTIONS)
    assert jnp.allclose(mean, mean_ref, atol=2e-2, rtol=2e-2)
    assert jnp.allclose(log_std, log_std_ref, atol=2e-2, rtol=2e-2)
    assert bool(jnp.all(log_std >= LOG_SIG_MIN)) and bool(jnp.all(log_std <= LOG_SIG_MAX))

    # second check: odd batch (exercises multi-tile grid + batch padding path)
    B2 = 20
    state2 = jax.random.normal(k_state2, (B2, NUM_INPUTS), jnp.float32)
    mean2, log_std2 = actor_forward(state2, params)
    jax.block_until_ready((mean2, log_std2))
    mean2_ref, log_std2_ref = actor_forward_ref(state2, params)
    assert mean2.shape == (B2, NUM_ACTIONS) and log_std2.shape == (B2, NUM_ACTIONS)
    assert jnp.allclose(mean2, mean2_ref, atol=2e-2, rtol=2e-2)
    assert jnp.allclose(log_std2, log_std2_ref, atol=2e-2, rtol=2e-2)

    # TODO(synk): ActorNetwork.sample() (rsample + tanh squash + log_prob) is a
    # stochastic method outside forward(); not implemented in the kernel.
    print("KERNEL_OK")
</pallas_src>

<mosaic_0001>
module attributes {stable_mosaic.version = 11 : i64} {
  func.func @_actor_kernel(%arg0: i32, %arg1: memref<8x16xf32, #tpu.memory_space<vmem>>, %arg2: memref<16x32xbf16, #tpu.memory_space<vmem>>, %arg3: memref<32x32xbf16, #tpu.memory_space<vmem>>, %arg4: memref<32x8xbf16, #tpu.memory_space<vmem>>, %arg5: memref<8x32xf32, #tpu.memory_space<vmem>>, %arg6: memref<8x8xf32, #tpu.memory_space<vmem>>) attributes {dimension_semantics = [#tpu.dimension_semantics<parallel>], iteration_bounds = array<i64: 1>, scalar_prefetch = 0 : i64, scratch_operands = 0 : i64, tpu.core_type = #tpu.core_type<tc>, window_params = [{transform_indices = @transform_0, window_bounds = array<i64: 8, 16>}, {pipeline_mode = #tpu.pipeline_mode<synchronous>, transform_indices = @transform_1, window_bounds = array<i64: 16, 32>}, {pipeline_mode = #tpu.pipeline_mode<synchronous>, transform_indices = @transform_2, window_bounds = array<i64: 32, 32>}, {pipeline_mode = #tpu.pipeline_mode<synchronous>, transform_indices = @transform_3, window_bounds = array<i64: 32, 8>}, {pipeline_mode = #tpu.pipeline_mode<synchronous>, transform_indices = @transform_4, window_bounds = array<i64: 8, 32>}, {transform_indices = @transform_5, window_bounds = array<i64: 8, 8>}]} {
    %c0 = arith.constant 0 : index
    %c0_0 = arith.constant 0 : index
    %0 = vector.load %arg5[%c0, %c0_0] : memref<8x32xf32, #tpu.memory_space<vmem>>, vector<1x32xf32>
    %c1 = arith.constant 1 : index
    %c0_1 = arith.constant 0 : index
    %1 = vector.load %arg5[%c1, %c0_1] : memref<8x32xf32, #tpu.memory_space<vmem>>, vector<1x32xf32>
    %c2 = arith.constant 2 : index
    %c0_2 = arith.constant 0 : index
    %2 = vector.load %arg5[%c2, %c0_2] : memref<8x32xf32, #tpu.memory_space<vmem>>, vector<1x8xf32>
    %c3 = arith.constant 3 : index
    %c0_3 = arith.constant 0 : index
    %3 = vector.load %arg5[%c3, %c0_3] : memref<8x32xf32, #tpu.memory_space<vmem>>, vector<1x8xf32>
    %c4 = arith.constant 4 : index
    %c0_4 = arith.constant 0 : index
    %4 = vector.load %arg5[%c4, %c0_4] : memref<8x32xf32, #tpu.memory_space<vmem>>, vector<1x8xf32>
    %c0_5 = arith.constant 0 : index
    %c0_6 = arith.constant 0 : index
    %5 = vector.load %arg1[%c0_5, %c0_6] : memref<8x16xf32, #tpu.memory_space<vmem>>, vector<8x16xf32>
    %6 = arith.truncf %5 : vector<8x16xf32> to vector<8x16xbf16>
    %c0_7 = arith.constant 0 : index
    %c0_8 = arith.constant 0 : index
    %7 = vector.load %arg2[%c0_7, %c0_8] : memref<16x32xbf16, #tpu.memory_space<vmem>>, vector<16x32xbf16>
    %cst = arith.constant dense<0.000000e+00> : vector<8x32xf32>
    %8 = tpu.matmul %6, %7, %cst {dimension_numbers = #tpu.dot_dimension_numbers<[1], [0], [0], [1], [0, 0, 1, 1], [], []>} : vector<8x16xbf16>, vector<16x32xbf16>, vector<8x32xf32> -> vector<8x32xf32>
    %9 = vector.broadcast %0 : vector<1x32xf32> to vector<8x32xf32>
    %10 = arith.addf %8, %9 : vector<8x32xf32>
    %cst_9 = arith.constant 0.000000e+00 : f32
    %11 = vector.broadcast %cst_9 : f32 to vector<8x32xf32>
    %12 = arith.maximumf %10, %11 : vector<8x32xf32>
    %13 = arith.truncf %12 : vector<8x32xf32> to vector<8x32xbf16>
    %c0_10 = arith.constant 0 : index
    %c0_11 = arith.constant 0 : index
    %14 = vector.load %arg3[%c0_10, %c0_11] : memref<32x32xbf16, #tpu.memory_space<vmem>>, vector<32x32xbf16>
    %cst_12 = arith.constant dense<0.000000e+00> : vector<8x32xf32>
    %15 = tpu.matmul %13, %14, %cst_12 {dimension_numbers = #tpu.dot_dimension_numbers<[1], [0], [0], [1], [0, 0, 1, 1], [], []>} : vector<8x32xbf16>, vector<32x32xbf16>, vector<8x32xf32> -> vector<8x32xf32>
    %16 = vector.broadcast %1 : vector<1x32xf32> to vector<8x32xf32>
    %17 = arith.addf %15, %16 : vector<8x32xf32>
    %cst_13 = arith.constant 0.000000e+00 : f32
    %18 = vector.broadcast %cst_13 : f32 to vector<8x32xf32>
    %19 = arith.maximumf %17, %18 : vector<8x32xf32>
    %20 = arith.truncf %19 : vector<8x32xf32> to vector<8x32xbf16>
    %c0_14 = arith.constant 0 : index
    %c0_15 = arith.constant 0 : index
    %21 = vector.load %arg4[%c0_14, %c0_15] : memref<32x8xbf16, #tpu.memory_space<vmem>>, vector<32x8xbf16>
    %cst_16 = arith.constant dense<0.000000e+00> : vector<8x8xf32>
    %22 = tpu.matmul %20, %21, %cst_16 {dimension_numbers = #tpu.dot_dimension_numbers<[1], [0], [0], [1], [0, 0, 1, 1], [], []>} : vector<8x32xbf16>, vector<32x8xbf16>, vector<8x8xf32> -> vector<8x8xf32>
    %23 = vector.broadcast %2 : vector<1x8xf32> to vector<8x8xf32>
    %24 = arith.addf %22, %23 : vector<8x8xf32>
    %25 = vector.broadcast %3 : vector<1x8xf32> to vector<8x8xf32>
    %26 = arith.maximumf %24, %25 : vector<8x8xf32>
    %27 = vector.broadcast %4 : vector<1x8xf32> to vector<8x8xf32>
    %28 = arith.minimumf %26, %27 : vector<8x8xf32>
    %c0_17 = arith.constant 0 : index
    %c0_18 = arith.constant 0 : index
    %29 = vector.load %arg6[%c0_17, %c0_18] : memref<8x8xf32, #tpu.memory_space<vmem>>, vector<8x8xf32>
    tpu.vector_store %arg6[%c0_17, %c0_18], %28 {strides = array<i32>} : memref<8x8xf32, #tpu.memory_space<vmem>>, vector<8x8xf32>,
    return
  }
  func.func @transform_0(%arg0: i32) -> (i32, i32) {
    %c0_i32 = arith.constant 0 : i32
    %c0_i32_0 = arith.constant 0 : i32
    return %arg0, %c0_i32 : i32, i32
  }
  func.func @transform_1(%arg0: i32) -> (i32, i32) {
    %c0_i32 = arith.constant 0 : i32
    %c0_i32_0 = arith.constant 0 : i32
    %c0_i32_1 = arith.constant 0 : i32
    return %c0_i32, %c0_i32_0 : i32, i32
  }
  func.func @transform_2(%arg0: i32) -> (i32, i32) {
    %c0_i32 = arith.constant 0 : i32
    %c0_i32_0 = arith.constant 0 : i32
    %c0_i32_1 = arith.constant 0 : i32
    return %c0_i32, %c0_i32_0 : i32, i32
  }
  func.func @transform_3(%arg0: i32) -> (i32, i32) {
    %c0_i32 = arith.constant 0 : i32
    %c0_i32_0 = arith.constant 0 : i32
    %c0_i32_1 = arith.constant 0 : i32
    return %c0_i32, %c0_i32_0 : i32, i32
  }
  func.func @transform_4(%arg0: i32) -> (i32, i32) {
    %c0_i32 = arith.constant 0 : i32
    %c0_i32_0 = arith.constant 0 : i32
    %c0_i32_1 = arith.constant 0 : i32
    return %c0_i32, %c0_i32_0 : i32, i32
  }
  func.func @transform_5(%arg0: i32) -> (i32, i32) {
    %c0_i32 = arith.constant 0 : i32
    %c0_i32_0 = arith.constant 0 : i32
    return %arg0, %c0_i32 : i32, i32
  }
}

</mosaic_0001>

<bundles_post_ra>
// kernel: tpu_custom_call.1
= control target key start
LH: loop header
LB: loop body
LE: loop exit
PB: predicated region body
PF: predicated region fallthrough
CT: control target
= control target key end

     0   :  { %10 = vsyncpa [#allocation3], 0  ;;  %s449_s0 = inlined_call_operand.vmem [shape: f32[8,16], index: 0, kind: input, shape index: {}]   ;;  %s450_s1 = inlined_call_operand.hbm [shape: bf16[16,32], index: 1, kind: input, shape index: {}]   ;;  %s451_s2 = inlined_call_operand.vmem [shape: bf16[32,32], index: 2, kind: input, shape index: {}]   ;;  %s452_s3 = inlined_call_operand.vmem [shape: bf16[32,8], index: 3, kind: input, shape index: {}]   ;;  %s453_s4 = inlined_call_operand.vmem [shape: f32[8,32], index: 4, kind: input, shape index: {}]   ;;  %s454_s5 = inlined_call_operand.hbm [shape: f32[8,8], index: 5, kind: output, shape index: {}]  }
   0x1   :  { %11 = vsyncpa [#allocation4], 0  ;;  %s359_s18 = smov [#allocation2]   ;;  %s311_s22 = scalar_lea.hbm %s450_s1, 128 }
   0x2   :  { %s19_s19 = sshll.u32 %s359_s18, 4  ;;  %p312_p0 = scmp.ne.s32.totalorder %s450_s1, %s311_s22  ;;  %s20_s19 = int_to_ptr.vmem [resolvable:$true] %s19_s19 }
   0x3   :  { %p315_p1 = scmp.lt.u32.totalorder %s311_s22, %s450_s1 }
   0x5   :  { %p317_p2 = pnand %p315_p1, %p312_p0 }
   0x7   :  { %320 = shalt.err (!%p317_p2)
}
   0x8   :  { %s321_s27 = scalar_lea.vmem %s20_s19, 128  ;;  %p326_p4 = scmp.lt.s32.totalorder %s20_s19, %s20_s19 }
   0x9   :  { %p322_p3 = scmp.ne.s32.totalorder %s20_s19, %s321_s27  ;;  %p327_p5 = scmp.lt.s32.totalorder %s321_s27, %s321_s27 }
   0xb   :  { %p328_p6 = por %p327_p5, %p326_p4 }
   0xd   :  { %p329_p7 = pnand %p328_p6, %p322_p3 }
   0xf   :  { %332 = shalt.err (!%p329_p7)
}
  0x10   :  { %s360_s28 = smov 64   ;;  %s361_s29 = smov 4  }
  0x11   :  { %25 = dma.hbm_to_vmem [thread:$0]  %s450_s1, 128, %s20_s19, [#allocation3], %s360_s28, %s360_s28, %s361_s29  }
  0x12   :  { %355 = dma.done.wait [#allocation3], 128  }
  0x13   :  { %356 = vsyncadd [#allocation3], 4294967168  ;;  %v362_v0 = vmov 0.0   ;;  %vm363_vm0 = vmmov 0   ;;  %v306_v1 = vld [vmem:[#allocation2] sm:$0xff]   ;;  %vm55_vm1 = vcmask 130048  }
  0x14   :  { %278 = vmatprep.subr.bf16.mxu0 %v362_v0  ;;  %280 = vmatprep.mubr.msk.bf16.mxu0 %vm363_vm0, %v362_v0  ;;  %v41_v2 = vld [vmem:[%s449_s0] sm:$0xff]  ;;  %v308_v5 = vld [vmem:[%s451_s2 + $0x8] sm:$0xff]   ;;  %vm121_vm2 = vcmask 261120   ;;  %s364_s23 = smov [#allocation5]   ;;  %vm240_vm3 = vcmask 64512  }
  0x15   :  { %284 = vmatprep.subr.bf16.mxu1 %v362_v0  ;;  %288 = vmatprep.mubr.msk.bf16.mxu1 %vm363_vm0, %v362_v0  ;;  %v42_v3 = vpack.c.bf16 %v41_v2, %v41_v2  ;;  %v307_v4 = vld [vmem:[%s451_s2] sm:$0xff]   ;;  %v310_v15 = vld [vmem:[%s452_s3 + $0x8] sm:$0xff]   ;;  %s248_s24 = sshll.u32 %s364_s23, 4  ;;  %s249_s24 = int_to_ptr.vmem [resolvable:$true] %s248_s24 }
  0x16   :  { %279 = vmatpush3.bf16.msra.mxu0 %v306_v1  ;;  %285 = vmatpush3.bf16.msra.mxu1 %v307_v4  ;;  %v309_v6 = vld [vmem:[%s452_s3] sm:$0xff]   ;;  %s333_s25 = scalar_lea.vmem %s249_s24, 128  ;;  %p338_p9 = scmp.lt.s32.totalorder %s249_s24, %s249_s24 }
  0x17   :  { %292 = vmatprep.subr.bf16.mxu0 %v362_v0  ;;  %286 = vmatprep.subr.bf16.mxu1 %v362_v0  ;;  %v257_v7 = vld [vmem:[%s453_s4] ss:$0 sm:$0xff]  ;;  %v260_v16 = vld [vmem:[%s453_s4 + $0x1] ss:$0 sm:$0xff]  ;;  %v264_v24 = vld [vmem:[%s453_s4 + $0x2] ss:$0 sm:$0xff]  ;;  %p334_p8 = scmp.ne.s32.totalorder %s249_s24, %s333_s25  ;;  %p339_p10 = scmp.lt.s32.totalorder %s333_s25, %s333_s25 }
  0x18   :  { %v268_v25 = vld [vmem:[%s453_s4 + $0x3] ss:$0 sm:$0xff]  ;;  %v269_v29 = vld [vmem:[%s453_s4 + $0x4] ss:$0 sm:$0xff] }
  0x19   :  { %281 = vmatmul.mubr.msk.bf16.vlgmr.msra.gmra.mrb[0].mxu0 %vm55_vm1, %v42_v3  ;;  %p340_p11 = por %p339_p10, %p338_p9 }
  0x1a   :  { %296 = vmatprep.mubr.msk.bf16.mxu0 %vm363_vm0, %v362_v0  ;;  %287 = vmatpush3.bf16.msra.mxu1 %v308_v5 }
  0x1b   :  { %293 = vmatpush3.bf16.msra.mxu0 %v309_v6  ;;  %p341_p12 = pnand %p340_p11, %p334_p8 }
  0x1c   :  { %294 = vmatprep.subr.bf16.mxu0 %v362_v0 }
  0x1f   :  { %295 = vmatpush3.bf16.msra.mxu0 %v310_v15 }
  0xec   :  { %v93_v8 = vpop.f32.mrb[0].mxu0 }
  0xed   :  { %v94_v9 = vadd.f32 %v257_v7, %v93_v8  ;;  %v282_v10 = vpop.f32.mrb[1].mxu0 }
  0xee   :  { %v96_v11 = vpop.f32.mrb[2].mxu0 }
  0xef   :  { %v99_v12 = vmax.f32 %v94_v9, 0.0  ;;  %v283_v13 = vpop.f32.mrb[3].mxu0 }
  0xf1   :  { %v100_v14 = vpack.c.bf16 %v99_v12, %v99_v12 }
  0xf3   :  { %289 = vmatmul.mubr.msk.bf16.vlgmr.msra.gmra.mrb[0].mxu1 %vm121_vm2, %v100_v14 }
 0x1c6   :  { %v159_v17 = vpop.f32.mrb[0].mxu1 }
 0x1c7   :  { %v160_v18 = vadd.f32 %v260_v16, %v159_v17  ;;  %v290_v19 = vpop.f32.mrb[1].mxu1 }
 0x1c8   :  { %v162_v20 = vpop.f32.mrb[2].mxu1 }
 0x1c9   :  { %v165_v21 = vmax.f32 %v160_v18, 0.0  ;;  %v291_v22 = vpop.f32.mrb[3].mxu1 }
 0x1cb   :  { %v166_v23 = vpack.c.bf16 %v165_v21, %v165_v21 }
 0x1cd   :  { %297 = vmatmul.mubr.msk.bf16.vlgmr.msra.gmra.mrb[4].mxu0 %vm121_vm2, %v166_v23 }
 0x2a0   :  { %v224_v26 = vpop.f32.mrb[4].mxu0 }
 0x2a1   :  { %v225_v27 = vadd.f32 %v264_v24, %v224_v26  ;;  %v298_v28 = vpop.f32.mrb[5].mxu0 }
 0x2a2   :  { %v227_v30 = vpop.f32.mrb[6].mxu0 }
 0x2a3   :  { %v234_v31 = vmax.f32 %v225_v27, %v268_v25  ;;  %v299_v32 = vpop.f32.mrb[7].mxu0 }
 0x2a5   :  { %v239_v33 = vmin.f32 %v234_v31, %v269_v29 }
 0x2a7   :  { %241 = vst.msk [vmem:[#allocation5] sm:$0xff] %vm240_vm3, %v239_v33 }
 0x2a8   :  { %344 = shalt.err (!%p341_p12)
}
 0x2a9   :  { %s345_s4 = scalar_lea.hbm %s454_s5, 128 }
 0x2aa   :  { %p346_p13 = scmp.ne.s32.totalorder %s454_s5, %s345_s4  ;;  %p349_p0 = scmp.lt.u32.totalorder %s345_s4, %s454_s5 }
 0x2ac   :  { %p351_p1 = pnand %p349_p0, %p346_p13 }
 0x2ae   :  { %354 = shalt.err (!%p351_p1)
}
 0x2af   :  { %251 = dma.vmem_to_hbm [thread:$0]  %s249_s24, 128, %s454_s5, [#allocation4]  }
 0x2b0   :  { %357 = dma.done.wait [#allocation4], 128  }
 0x2b1   :  { %358 = vsyncadd [#allocation4], 4294967168 }
 0x2b2   :  { %255 = vsyncpa [#allocation3], 1 }
 0x2b3   :  { %256 = vsyncpa [#allocation4], 1 }

</bundles_post_ra>
